<compile_context>
chip_gen: v5e
topology: v5e:2x2
jax: 0.10.0
libtpu: 0.0.40
codegen_flags: <defaults>
</compile_context>

<pallas_src>
import functools

import jax
import jax.numpy as jnp
from jax import lax
from jax.experimental import pallas as pl
from jax.experimental.pallas import tpu as pltpu


def _label_smoothing_kernel(tgt_ref, x_ref, out_ref, *,
                            eps_val, confidence, lse_coef,
                            blocks_per_part, n_total):
    """One (tm, C) row block; accumulates the per-part partial loss sum into out_ref."""
    c = pl.program_id(0)          # part (parallel axis -> megacore on v7x)
    i = pl.program_id(1)          # row-block within part (reduction axis)

    @pl.when(i == 0)
    def _():
        out_ref[...] = jnp.zeros_like(out_ref)

    x = x_ref[...]                                            # (tm, C), native dtype
    tm, C = x.shape

    # Numerically stable log-softmax pieces. max in native dtype; single widening
    # via the centering subtract; single full-width exp (EUP) pass.
    m = jnp.max(x, axis=-1, keepdims=True)                    # (tm, 1)
    xc = (x - m).astype(jnp.float32)                          # (tm, C) centered, f32
    e = jnp.exp(xc)                                           # only full-width EUP op
    lse_c = jnp.log(jnp.sum(e, axis=-1, keepdims=True))       # (tm, 1) = lse - m

    # Merged smoothed-target weighted reduction:
    #   loss_row = lse_coef*lse - sum_j w_j*x_j
    #            = lse_coef*lse_c - sum_j w_j*(x_j - m)   (since sum_j w_j == lse_coef)
    cls_idx = lax.broadcasted_iota(jnp.int32, (tm, C), 1)
    w = jnp.where(cls_idx == tgt_ref[...],
                  jnp.float32(confidence), jnp.float32(eps_val))
    wsum_c = jnp.sum(xc * w, axis=-1, keepdims=True)          # (tm, 1)
    if lse_coef == 1.0:                                       # static: classes == C
        loss_row = lse_c - wsum_c
    else:
        loss_row = jnp.float32(lse_coef) * lse_c - wsum_c

    # Mask rows beyond n_total (partial tail tile / clamped duplicate block).
    # Keep the select (NOT multiply-by-mask): padded rows may hold Inf/NaN.
    blk = c * blocks_per_part + i
    row_ids = lax.broadcasted_iota(jnp.int32, (tm, 1), 0)
    valid = (blk * tm + row_ids) < n_total
    # TODO(synk): for N in the many-millions, spread block sums across lanes or use
    # Kahan to bound accumulator drift; a single f32 running sum is fine here.
    out_ref[...] += jnp.sum(jnp.where(valid, loss_row, 0.0))


def label_smoothing_loss(pred, target, *, classes=None, smoothing=0.2,
                         weight=None, num_parts=None):
    """LabelSmoothingLoss(classes, smoothing, dim=-1, weight=None) forward pass."""
    # TODO(synk): per-class `weight` not implemented (module default is weight=None).
    assert weight is None, "per-class weight not supported"
    assert 0 <= smoothing < 1
    N, C = pred.shape
    if classes is None:
        classes = C
    if smoothing > 0:
        assert classes > 1, "smoothing > 0 requires classes > 1"
    confidence = 1.0 - smoothing
    eps_val = (smoothing / (classes - 1)) if classes > 1 else 0.0
    lse_coef = eps_val * (C - 1) + confidence        # == 1.0 when classes == C

    itemsize = jnp.dtype(pred.dtype).itemsize

    # Generation-dependent budgets.
    try:
        vmem_bytes = int(pltpu.get_tpu_info().vmem_capacity_bytes)
    except Exception:
        vmem_bytes = 64 * 1024 * 1024                # conservative (v7x-like) fallback
    if vmem_bytes <= 80 * 1024 * 1024:
        # v7x-class: 64 MiB VMEM per TC, 2 TensorCores per chip.
        auto_parts = 2
        per_block_budget = 12 * 1024 * 1024
        vmem_limit = 48 * 1024 * 1024
    else:
        # v5e / v6e: 128 MiB VMEM, single TensorCore.
        auto_parts = 1
        per_block_budget = 28 * 1024 * 1024
        vmem_limit = 100 * 1024 * 1024
    if num_parts is None:
        num_parts = auto_parts

    # Row-tile sizing by bytes: logits tile (tm*C*itemsize) plus the lane-padded
    # (tm, 128) int32 target tile (tm*512 B). Double-buffered by the pipeline, so
    # 2*per_block_budget of VMEM for inputs stays well under vmem_limit.
    bytes_per_row = C * itemsize + 128 * 4
    tm = per_block_budget // bytes_per_row
    tm = max(8, min(int(tm), 16384))
    tm = min(tm, ((N + 7) // 8) * 8)
    tm = max(8, (tm // 8) * 8)

    blocks_total = pl.cdiv(N, tm)
    num_parts = max(1, min(num_parts, blocks_total))   # no wasted duplicate blocks
    blocks_per_part = pl.cdiv(blocks_total, num_parts)

    def row_block_map(c, i):
        # clamp so duplicated / out-of-range blocks stay in bounds (masked in-kernel)
        return (jnp.minimum(c * blocks_per_part + i, blocks_total - 1), 0)

    tgt2d = target.astype(jnp.int32).reshape(N, 1)

    kernel = functools.partial(
        _label_smoothing_kernel,
        eps_val=float(eps_val),
        confidence=float(confidence),
        lse_coef=float(lse_coef),
        blocks_per_part=blocks_per_part,
        n_total=N,
    )

    out = pl.pallas_call(
        kernel,
        out_shape=jax.ShapeDtypeStruct((1, num_parts * 128), jnp.float32),
        grid_spec=pltpu.PrefetchScalarGridSpec(
            num_scalar_prefetch=0,
            grid=(num_parts, blocks_per_part),
            in_specs=[
                pl.BlockSpec((tm, 1), row_block_map),   # targets (row block)
                pl.BlockSpec((tm, C), row_block_map),   # logits  (row block, full C)
            ],
            # each part owns its own lane-aligned (1, 128) partial-sum block
            out_specs=pl.BlockSpec((1, 128), lambda c, i: (0, c)),
        ),
        compiler_params=pltpu.CompilerParams(
            dimension_semantics=("parallel", "arbitrary"),
            vmem_limit_bytes=vmem_limit,
        ),
        cost_estimate=pl.CostEstimate(
            flops=int(8 * N * C),
            transcendentals=int(N * C),
            bytes_accessed=int(N * C * itemsize + N * 4),
        ),
    )(tgt2d, pred)

    partials = out.reshape(num_parts, 128)[:, 0]
    return jnp.sum(partials) / jnp.float32(N)


def _label_smoothing_ref(x, t, classes, smoothing):
    confidence = 1.0 - smoothing
    eps = smoothing / (classes - 1)
    lp = jax.nn.log_softmax(x.astype(jnp.float32), axis=-1)
    N, C = x.shape
    true_dist = jnp.full((N, C), eps, dtype=jnp.float32)
    true_dist = true_dist.at[jnp.arange(N), t.astype(jnp.int32)].set(confidence)
    return jnp.mean(jnp.sum(-true_dist * lp, axis=-1))


if __name__ == "__main__":
    N, CLASSES = 16, 11          # module defaults: classes=11, smoothing=0.2
    SMOOTHING = 0.2
    key = jax.random.PRNGKey(0)
    kx, kt = jax.random.split(key)
    pred = jax.random.normal(kx, (N, CLASSES), dtype=jnp.float32)
    target = jax.random.randint(kt, (N,), 0, CLASSES, dtype=jnp.int32)

    loss = label_smoothing_loss(pred, target, classes=CLASSES, smoothing=SMOOTHING)
    loss = jax.block_until_ready(loss)

    ref = _label_smoothing_ref(pred, target, CLASSES, SMOOTHING)
    assert jnp.allclose(loss, ref, rtol=1e-5, atol=1e-5), (loss, ref)
    print("KERNEL_OK")
</pallas_src>

<mosaic_0001>
module attributes {stable_mosaic.version = 11 : i64} {
  func.func @_label_smoothing_kernel(%arg0: i32, %arg1: i32, %arg2: memref<16x1xi32, #tpu.memory_space<vmem>>, %arg3: memref<16x11xf32, #tpu.memory_space<vmem>>, %arg4: memref<1x128xf32, #tpu.memory_space<vmem>>) attributes {dimension_semantics = [#tpu.dimension_semantics<parallel>, #tpu.dimension_semantics<arbitrary>], iteration_bounds = array<i64: 1, 1>, scalar_prefetch = 0 : i64, scratch_operands = 0 : i64, tpu.core_type = #tpu.core_type<tc>, window_params = [{transform_indices = @transform_0, window_bounds = array<i64: 16, 1>}, {transform_indices = @transform_1, window_bounds = array<i64: 16, 11>}, {transform_indices = @transform_2, window_bounds = array<i64: 1, 128>}]} {
    %c0_i32 = arith.constant 0 : i32
    %0 = arith.cmpi eq, %arg1, %c0_i32 : i32
    %1 = arith.extui %0 : i1 to i32
    %c0_i32_0 = arith.constant 0 : i32
    %2 = arith.cmpi ne, %1, %c0_i32_0 : i32
    scf.if %2 {
      %cst_15 = arith.constant 0.000000e+00 : f32
      %41 = vector.broadcast %cst_15 : f32 to vector<1x128xf32>
      %c0_16 = arith.constant 0 : index
      %c0_17 = arith.constant 0 : index
      %42 = vector.load %arg4[%c0_16, %c0_17] : memref<1x128xf32, #tpu.memory_space<vmem>>, vector<1x128xf32>
      tpu.vector_store %arg4[%c0_16, %c0_17], %41 {strides = array<i32>} : memref<1x128xf32, #tpu.memory_space<vmem>>, vector<1x128xf32>,
    } else {
    }
    %c0 = arith.constant 0 : index
    %c0_1 = arith.constant 0 : index
    %3 = vector.load %arg3[%c0, %c0_1] : memref<16x11xf32, #tpu.memory_space<vmem>>, vector<16x11xf32>
    %cst = arith.constant dense<0xFF800000> : vector<16xf32>
    %4 = vector.multi_reduction <maximumf>, %3, %cst [1] : vector<16x11xf32> to vector<16xf32>
    %5 = vector.shape_cast %4 : vector<16xf32> to vector<16x1xf32>
    %6 = vector.broadcast %5 : vector<16x1xf32> to vector<16x11xf32>
    %7 = arith.subf %3, %6 : vector<16x11xf32>
    %8 = math.exp %7 : vector<16x11xf32>
    %cst_2 = arith.constant dense<0.000000e+00> : vector<16xf32>
    %9 = vector.multi_reduction <add>, %8, %cst_2 [1] : vector<16x11xf32> to vector<16xf32>
    %10 = vector.shape_cast %9 : vector<16xf32> to vector<16x1xf32>
    %11 = math.log %10 : vector<16x1xf32>
    %12 = tpu.iota {dimensions = array<i32: 1>} : vector<16x11xi32>
    %c0_3 = arith.constant 0 : index
    %c0_4 = arith.constant 0 : index
    %13 = vector.load %arg2[%c0_3, %c0_4] : memref<16x1xi32, #tpu.memory_space<vmem>>, vector<16x1xi32>
    %14 = vector.broadcast %13 : vector<16x1xi32> to vector<16x11xi32>
    %15 = arith.cmpi eq, %12, %14 : vector<16x11xi32>
    %cst_5 = arith.constant 8.000000e-01 : f32
    %cst_6 = arith.constant 2.000000e-02 : f32
    %16 = vector.broadcast %cst_5 : f32 to vector<16x11xf32>
    %17 = vector.broadcast %cst_6 : f32 to vector<16x11xf32>
    %18 = arith.select %15, %16, %17 : vector<16x11xi1>, vector<16x11xf32>
    %19 = arith.mulf %7, %18 : vector<16x11xf32>
    %cst_7 = arith.constant dense<0.000000e+00> : vector<16xf32>
    %20 = vector.multi_reduction <add>, %19, %cst_7 [1] : vector<16x11xf32> to vector<16xf32>
    %21 = vector.shape_cast %20 : vector<16xf32> to vector<16x1xf32>
    %22 = arith.subf %11, %21 : vector<16x1xf32>
    %c1_i32 = arith.constant 1 : i32
    %23 = arith.muli %arg0, %c1_i32 : i32
    %24 = arith.addi %23, %arg1 : i32
    %25 = tpu.iota {dimensions = array<i32: 0>} : vector<16x1xi32>
    %c16_i32 = arith.constant 16 : i32
    %26 = arith.muli %24, %c16_i32 : i32
    %27 = vector.broadcast %26 : i32 to vector<16x1xi32>
    %28 = arith.addi %27, %25 : vector<16x1xi32>
    %c16_i32_8 = arith.constant 16 : i32
    %29 = vector.broadcast %c16_i32_8 : i32 to vector<16x1xi32>
    %30 = arith.cmpi slt, %28, %29 : vector<16x1xi32>
    %c0_9 = arith.constant 0 : index
    %c0_10 = arith.constant 0 : index
    %31 = vector.load %arg4[%c0_9, %c0_10] : memref<1x128xf32, #tpu.memory_space<vmem>>, vector<1x128xf32>
    %cst_11 = arith.constant 0.000000e+00 : f32
    %32 = vector.broadcast %cst_11 : f32 to vector<16x1xf32>
    %33 = arith.select %30, %22, %32 : vector<16x1xi1>, vector<16x1xf32>
    %34 = vector.shape_cast %33 : vector<16x1xf32> to vector<1x16x1xf32>
    %cst_12 = arith.constant dense<0.000000e+00> : vector<1xf32>
    %35 = vector.multi_reduction <add>, %34, %cst_12 [1, 2] : vector<1x16x1xf32> to vector<1xf32>
    %36 = vector.shape_cast %35 : vector<1xf32> to vector<1x1x1xf32>
    %37 = vector.extract %36[0, 0, 0] : f32 from vector<1x1x1xf32>
    %38 = vector.broadcast %37 : f32 to vector<1x128xf32>
    %39 = arith.addf %31, %38 : vector<1x128xf32>
    %c0_13 = arith.constant 0 : index
    %c0_14 = arith.constant 0 : index
    %40 = vector.load %arg4[%c0_13, %c0_14] : memref<1x128xf32, #tpu.memory_space<vmem>>, vector<1x128xf32>
    tpu.vector_store %arg4[%c0_13, %c0_14], %39 {strides = array<i32>} : memref<1x128xf32, #tpu.memory_space<vmem>>, vector<1x128xf32>,
    return
  }
  func.func @transform_0(%arg0: i32, %arg1: i32) -> (i32, i32) {
    %c1_i32 = arith.constant 1 : i32
    %0 = arith.muli %arg0, %c1_i32 : i32
    %1 = arith.addi %0, %arg1 : i32
    %c0_i32 = arith.constant 0 : i32
    %2 = arith.minsi %1, %c0_i32 : i32
    %c0_i32_0 = arith.constant 0 : i32
    %c0_i32_1 = arith.constant 0 : i32
    return %2, %c0_i32_0 : i32, i32
  }
  func.func @transform_1(%arg0: i32, %arg1: i32) -> (i32, i32) {
    %c1_i32 = arith.constant 1 : i32
    %0 = arith.muli %arg0, %c1_i32 : i32
    %1 = arith.addi %0, %arg1 : i32
    %c0_i32 = arith.constant 0 : i32
    %2 = arith.minsi %1, %c0_i32 : i32
    %c0_i32_0 = arith.constant 0 : i32
    %c0_i32_1 = arith.constant 0 : i32
    return %2, %c0_i32_0 : i32, i32
  }
  func.func @transform_2(%arg0: i32, %arg1: i32) -> (i32, i32) {
    %c0_i32 = arith.constant 0 : i32
    %c0_i32_0 = arith.constant 0 : i32
    return %c0_i32, %arg0 : i32, i32
  }
}

</mosaic_0001>

<bundles_post_ra>
// kernel: tpu_custom_call.1
= control target key start
LH: loop header
LB: loop body
LE: loop exit
PB: predicated region body
PF: predicated region fallthrough
CT: control target
= control target key end

     0   :  { %vm83_vm0 = vcmask 89088   ;;  %v229_v2 = vmov 0   ;;  %s269_s0 = inlined_call_operand.vmem [shape: s32[16,1], index: 0, kind: input, shape index: {}]   ;;  %s270_s1 = inlined_call_operand.vmem [shape: f32[16,11], index: 1, kind: input, shape index: {}]   ;;  %s271_s2 = inlined_call_operand.hbm [shape: f32[1,128], index: 2, kind: output, shape index: {}]  }
   0x1   :  { %v81_v0 = vld [vmem:[%s270_s1] sm:$0xff]  ;;  %193 = vset.pattern.permute.xlu1 %v229_v2  ;;  %194 = vset.pattern.permute.xlu0 %v229_v2 }
   0x2   :  { %v108_v1 = vld [vmem:[%s269_s0] sm:$0xff]  ;;  %v84_v3 = vsel %vm83_vm0, %v81_v0, -inf }
   0x3   :  { %85 = vmax.xlane.f32.xlu0 %v84_v3  ;;  %111 = vperm.xlu1 %193, %v108_v1  }
   0x4   :  { %7 = vsyncpa [#allocation3], 0  ;;  %v82_v4 = vld [vmem:[%s270_s1 + $0x8] sm:$0xff]  ;;  %v106_v7 = vlaneseq  ;;  %v230_v11 = vmov 0.02   ;;  %vm143_vm3 = vcmask 7168  }
   0x5   :  { %v87_v5 = vsel %vm83_vm0, %v82_v4, -inf  ;;  %v109_v6 = vld [vmem:[%s269_s0 + $0x8] sm:$0xff]  ;;  %v231_v41 = vmov 0.0   ;;  %s232_s0 = smov [#allocation2]   ;;  %s166_s19 = sshll.u32 %s271_s2, 4  ;;  %s167_s19 = int_to_ptr.hbm [resolvable:$true] %s166_s19 }
   0x6   :  { %v107_v8 = vand.u32 127, %v106_v7  ;;  %80 = vst [vmem:[#allocation2] sm:$0x1] %v231_v41  ;;  %s164_s1 = sshll.u32 %s232_s0, 4  ;;  %s165_s1 = int_to_ptr.vmem [resolvable:$true] %s164_s1 }
   0xb   :  { %88 = vmax.xlane.f32.xlu0 %v87_v5  ;;  %114 = vperm.xlu1 %193, %v109_v6  }
   0xd   :  { %v140_v49 = vld [vmem:[#allocation2] sm:$0x1] }
  0x75   :  { %v112_v9 = vpop.permute.xlu1 %111 }
  0x76   :  { %vm116_vm1 = vcmp.eq.s32.totalorder %v107_v8, %v112_v9  ;;  %v86_v10 = vpop.xlane.xlu0 %85 }
  0x77   :  { %v118_v12 = vsel %vm116_vm1, 0.8, %v230_v11  ;;  %v90_v13 = vsub.f32 %v81_v0, %v86_v10 }
  0x79   :  { %v92_v14 = vmul.f32 1.442695, %v90_v13  ;;  %v120_v15 = vmul.f32 %v118_v12, %v90_v13 }
  0x7b   :  { %195 = vpow2.f32 %v92_v14  ;;  %v122_v16 = vsel %vm83_vm0, %v120_v15, 0.0 }
  0x7c   :  { %123 = vadd.xlane.f32.xlu0 %v122_v16 }
  0x7d   :  { %v115_v17 = vpop.permute.xlu1 %114 }
  0x7e   :  { %vm117_vm2 = vcmp.eq.s32.totalorder %v107_v8, %v115_v17  ;;  %v89_v18 = vpop.xlane.xlu0 %88 }
  0x7f   :  { %v119_v19 = vsel %vm117_vm2, 0.8, %v230_v11  ;;  %v91_v20 = vsub.f32 %v82_v4, %v89_v18 }
  0x81   :  { %v196_v21 = vpop.eup %195  ;;  %v94_v22 = vmul.f32 1.442695, %v91_v20  ;;  %v121_v23 = vmul.f32 %v119_v19, %v91_v20 }
  0x82   :  { %v96_v24 = vsel %vm83_vm0, %v196_v21, 0.0 }
  0x83   :  { %197 = vpow2.f32 %v94_v22  ;;  %97 = vadd.xlane.f32.xlu2 %v96_v24  ;;  %v125_v25 = vsel %vm83_vm0, %v121_v23, 0.0 }
  0x84   :  { %126 = vadd.xlane.f32.xlu1 %v125_v25 }
  0x89   :  { %v198_v26 = vpop.eup %197 }
  0x8a   :  { %v99_v27 = vsel %vm83_vm0, %v198_v26, 0.0 }
  0x8b   :  { %100 = vadd.xlane.f32.xlu2 %v99_v27 }
  0xef   :  { %v124_v33 = vpop.xlane.xlu0 %123 }
  0xf6   :  { %v98_v28 = vpop.xlane.xlu2 %97 }
  0xf7   :  { %199 = vlog2.f32 %v98_v28  ;;  %v127_v36 = vpop.xlane.xlu1 %126 }
  0xfd   :  { %v200_v30 = vpop.eup %199 }
  0xfe   :  { %v101_v29 = vpop.xlane.xlu2 %100  ;;  %v103_v31 = vmul.f32 0.6931472, %v200_v30 }
  0xff   :  { %201 = vlog2.f32 %v101_v29 }
 0x100   :  { %v128_v34 = vsub.f32 %v103_v31, %v124_v33 }
 0x102   :  { %v144_v38 = vsel %vm143_vm3, %v128_v34, 0.0 }
 0x105   :  { %v202_v32 = vpop.eup %201 }
 0x106   :  { %v105_v35 = vmul.f32 0.6931472, %v202_v32 }
 0x108   :  { %v129_v37 = vsub.f32 %v105_v35, %v127_v36 }
 0x10a   :  { %v145_v39 = vsel %vm143_vm3, %v129_v37, 0.0 }
 0x10b   :  { %v146_v40 = vadd.f32 %v145_v39, %v144_v38 }
 0x10d   :  { %147 = vadd.xlane.f32.xlu2 %v146_v40 }
 0x180   :  { %v148_v42 = vpop.xlane.xlu2 %147 }
 0x181   :  { %v149_v43 = vrot.slane %v148_v42, 4 }
 0x183   :  { %v150_v44 = vadd.f32 %v149_v43, %v148_v42 }
 0x185   :  { %v151_v45 = vrot.slane %v150_v44, 2 }
 0x187   :  { %v152_v46 = vadd.f32 %v151_v45, %v150_v44 }
 0x189   :  { %v153_v47 = vrot.slane %v152_v46, 1 }
 0x18b   :  { %v154_v48 = vadd.f32 %v153_v47, %v152_v46 }
 0x18d   :  { %187 = vpush %v154_v48 }
 0x1be   :  { %s188_s20 = spop %187 }
 0x1bf   :  { %v156_v50 = vstv %s188_s20 }
 0x1c0   :  { %v157_v51 = vadd.f32 %v156_v50, %v140_v49 }
 0x1c2   :  { %158 = vst [vmem:[#allocation2] sm:$0x1] %v157_v51 }
 0x1c3   :  { %169 = dma.vmem_to_hbm [thread:$0]  %s165_s1, 16, %s167_s19, [#allocation3]  }
 0x1c4   :  { %227 = dma.done.wait [#allocation3], 16  }
 0x1c5   :  { %228 = vsyncadd [#allocation3], 4294967280 }
 0x1c6   :  { %174 = vsyncpa [#allocation3], 1 }

</bundles_post_ra>
